<compile_context>
chip_gen: v7x
topology: tpu7x:2x2x1
jax: 0.10.0
libtpu: 0.0.40
codegen_flags: <defaults>
</compile_context>

<pallas_src>
import jax
import jax.numpy as jnp
from jax.experimental import pallas as pl
from jax.experimental.pallas import tpu as pltpu


# ----------------------- host-side weight / selector prep -------------------
def _conv_to_toeplitz(w_hwio, W):
    """(3,3,Cin,Cout) conv weights -> (3, W*Cin, W*Cout) row-Toeplitz matrices.

    M[dy, s*Cin+ci, w*Cout+co] = w[dy, dx, ci, co] with s = w + dx - 1 (0<=s<W),
    so `x_row(dy) @ M[dy]` applies all 3 horizontal taps plus horizontal SAME
    padding of one kernel row in a single lane-dense matmul.
    """
    kh, kw, Cin, Cout = w_hwio.shape
    s = jnp.arange(W).reshape(1, W, 1)
    w = jnp.arange(W).reshape(1, 1, W)
    dx = jnp.arange(kw).reshape(kw, 1, 1)
    sel = (s == w + dx - 1).astype(w_hwio.dtype)             # (3, W, W)
    m = jnp.einsum('dsw,ydio->ysiwo', sel, w_hwio)           # (3, W, Cin, W, Cout)
    return m.reshape(kh, W * Cin, W * Cout)


def _pool_selectors(H, W, Cout):
    """0/1 matrices implementing the 2x2 max pool as exact copy-matmuls."""
    Ho, Wo = H // 2, W // 2
    ho = jnp.arange(Ho)[:, None]
    h = jnp.arange(H)[None, :]
    pe = (h == 2 * ho).astype(jnp.float32)                   # (Ho, H): even rows
    po = (h == 2 * ho + 1).astype(jnp.float32)               # (Ho, H): odd rows
    j = jnp.arange(Wo * Cout)
    src_e = (2 * (j // Cout)) * Cout + (j % Cout)            # even column group
    src_o = src_e + Cout                                     # odd column group
    k = jnp.arange(W * Cout)[:, None]
    se = (k == src_e[None, :]).astype(jnp.float32)           # (W*Cout, Wo*Cout)
    so = (k == src_o[None, :]).astype(jnp.float32)
    return pe, po, se, so


# ------------------------------ fused kernel --------------------------------
def _make_convblock_kernel(H, W, cins, cout, num_layers):
    def kernel(*refs):
        idx = 0
        x_ref = refs[idx]; idx += 1
        m_refs = refs[idx:idx + num_layers]; idx += num_layers
        b_refs = refs[idx:idx + num_layers]; idx += num_layers
        pe_ref, po_ref, se_ref, so_ref = refs[idx:idx + 4]; idx += 4
        o_ref = refs[idx]; idx += 1
        pad_ref = refs[idx]                                  # (H+2, W*max(cins)) VMEM

        # Rows 0 and H+1 stay zero -> vertical SAME padding for every layer.
        pad_ref[...] = jnp.zeros_like(pad_ref)

        act = x_ref[0].astype(jnp.float32)                   # (H, W*Cin0), lane-packed
        for l in range(num_layers):                          # layers unrolled (VMEM-resident)
            cin = cins[l]
            pad_ref[1:H + 1, 0:W * cin] = act                # stage current activation
            acc = jnp.zeros((H, W * cout), jnp.float32)
            for dy in range(3):                              # 3 lane-dense MXU pushes / layer
                rows = pad_ref[dy:dy + H, 0:W * cin]         # (H, W*cin)
                acc = acc + jnp.dot(rows, m_refs[l][dy],
                                    preferred_element_type=jnp.float32)
            act = jnp.maximum(acc + b_refs[l][...], 0.0)     # bias (1, W*cout) + ReLU

        # 2x2 max pool via exact 0/1 selection matmuls on the VMEM-resident act.
        rv = jnp.maximum(
            jnp.dot(pe_ref[...], act, preferred_element_type=jnp.float32),
            jnp.dot(po_ref[...], act, preferred_element_type=jnp.float32))  # (Ho, W*cout)
        p = jnp.maximum(
            jnp.dot(rv, se_ref[...], preferred_element_type=jnp.float32),
            jnp.dot(rv, so_ref[...], preferred_element_type=jnp.float32))   # (Ho, Wo*cout)
        o_ref[0] = p.astype(o_ref.dtype)

    return kernel


# ----------------------------- ConvBlock forward -----------------------------
def conv_block_forward(x_nchw, weights, biases):
    """weights[i]: (3,3,Cin_i,Cout) HWIO, biases[i]: (Cout,). NCHW in -> NCHW out."""
    B, Cin0, H, W = x_nchw.shape
    Cout = int(weights[0].shape[-1])
    num_layers = len(weights)
    cins = [int(w.shape[2]) for w in weights]
    assert cins[0] == Cin0 and H % 2 == 0 and W % 2 == 0
    Ho, Wo = H // 2, W // 2

    # Boundary layout plumbing only: NCHW -> lane-packed (B, H, W*Cin).
    x_pack = jnp.transpose(x_nchw, (0, 2, 3, 1)).reshape(B, H, W * Cin0)
    toes = [_conv_to_toeplitz(w, W) for w in weights]              # (3, W*Cin_l, W*Cout)
    btile = [jnp.tile(b, W).reshape(1, W * Cout) for b in biases]  # bias per lane column
    pe, po, se, so = _pool_selectors(H, W, Cout)

    in_specs = [pl.BlockSpec((1, H, W * Cin0), lambda i: (i, 0, 0))]
    for l in range(num_layers):
        in_specs.append(
            pl.BlockSpec((3, W * cins[l], W * Cout), lambda i: (0, 0, 0)))
    for _ in range(num_layers):
        in_specs.append(pl.BlockSpec((1, W * Cout), lambda i: (0, 0)))
    in_specs += [
        pl.BlockSpec((Ho, H), lambda i: (0, 0)),
        pl.BlockSpec((Ho, H), lambda i: (0, 0)),
        pl.BlockSpec((W * Cout, Wo * Cout), lambda i: (0, 0)),
        pl.BlockSpec((W * Cout, Wo * Cout), lambda i: (0, 0)),
    ]

    out = pl.pallas_call(
        _make_convblock_kernel(H, W, cins, Cout, num_layers),
        out_shape=jax.ShapeDtypeStruct((B, Ho, Wo * Cout), x_nchw.dtype),
        grid=(B,),
        in_specs=in_specs,
        out_specs=pl.BlockSpec((1, Ho, Wo * Cout), lambda i: (i, 0, 0)),
        scratch_shapes=[pltpu.VMEM((H + 2, W * max(cins)), jnp.float32)],
        compiler_params=pltpu.CompilerParams(
            dimension_semantics=("parallel",)),
    )(x_pack, *toes, *btile, pe, po, se, so)

    # Boundary layout plumbing back: (B, Ho, Wo*Cout) -> NCHW.
    return jnp.transpose(out.reshape(B, Ho, Wo, Cout), (0, 3, 1, 2))


# ----------------------------- pure-JAX reference ----------------------------
def ref_forward(x_nchw, weights, biases):
    x = x_nchw
    for w, b in zip(weights, biases):
        x = jax.lax.conv_general_dilated(
            x, w, window_strides=(1, 1), padding="SAME",
            dimension_numbers=("NCHW", "HWIO", "NCHW"))
        x = jnp.maximum(x + b.reshape(1, -1, 1, 1), 0.0)
    x = jax.lax.reduce_window(x, -jnp.inf, jax.lax.max,
                              (1, 1, 2, 2), (1, 1, 2, 2), "VALID")
    return x


if __name__ == "__main__":
    B, Cin, Cout, H, W = 2, 4, 8, 16, 16
    num_layers = 2

    key = jax.random.PRNGKey(0)
    kx, kp = jax.random.split(key)
    x = jax.random.normal(kx, (B, Cin, H, W), jnp.float32)

    weights, biases = [], []
    pkeys = jax.random.split(kp, 2 * num_layers)
    for i in range(num_layers):
        cin = Cin if i == 0 else Cout
        fan_in = cin * 3 * 3
        w = jax.random.normal(pkeys[2 * i], (3, 3, cin, Cout), jnp.float32) / jnp.sqrt(fan_in)
        b = 0.01 * jax.random.normal(pkeys[2 * i + 1], (Cout,), jnp.float32)
        weights.append(w)
        biases.append(b)

    out = conv_block_forward(x, weights, biases)
    out = jax.block_until_ready(out)

    assert out.shape == (B, Cout, H // 2, W // 2), out.shape
    ref = ref_forward(x, weights, biases)
    err = float(jnp.max(jnp.abs(out - ref)))
    assert jnp.allclose(out, ref, atol=1e-4, rtol=1e-4), err

    print("KERNEL_OK")
</pallas_src>

<mosaic_0001>
module attributes {stable_mosaic.version = 11 : i64} {
  func.func @kernel(%arg0: i32, %arg1: memref<1x16x64xf32, #tpu.memory_space<vmem>>, %arg2: memref<3x64x128xf32, #tpu.memory_space<vmem>>, %arg3: memref<3x128x128xf32, #tpu.memory_space<vmem>>, %arg4: memref<1x128xf32, #tpu.memory_space<vmem>>, %arg5: memref<1x128xf32, #tpu.memory_space<vmem>>, %arg6: memref<8x16xf32, #tpu.memory_space<vmem>>, %arg7: memref<8x16xf32, #tpu.memory_space<vmem>>, %arg8: memref<128x64xf32, #tpu.memory_space<vmem>>, %arg9: memref<128x64xf32, #tpu.memory_space<vmem>>, %arg10: memref<1x8x64xf32, #tpu.memory_space<vmem>>, %arg11: memref<18x128xf32, #tpu.memory_space<vmem>>) attributes {dimension_semantics = [#tpu.dimension_semantics<parallel>], iteration_bounds = array<i64: 2>, scalar_prefetch = 0 : i64, scratch_operands = 1 : i64, tpu.core_type = #tpu.core_type<tc>, window_params = [{transform_indices = @transform_0, window_bounds = array<i64: 1, 16, 64>}, {pipeline_mode = #tpu.pipeline_mode<synchronous>, transform_indices = @transform_1, window_bounds = array<i64: 3, 64, 128>}, {pipeline_mode = #tpu.pipeline_mode<synchronous>, transform_indices = @transform_2, window_bounds = array<i64: 3, 128, 128>}, {pipeline_mode = #tpu.pipeline_mode<synchronous>, transform_indices = @transform_3, window_bounds = array<i64: 1, 128>}, {pipeline_mode = #tpu.pipeline_mode<synchronous>, transform_indices = @transform_4, window_bounds = array<i64: 1, 128>}, {pipeline_mode = #tpu.pipeline_mode<synchronous>, transform_indices = @transform_5, window_bounds = array<i64: 8, 16>}, {pipeline_mode = #tpu.pipeline_mode<synchronous>, transform_indices = @transform_6, window_bounds = array<i64: 8, 16>}, {pipeline_mode = #tpu.pipeline_mode<synchronous>, transform_indices = @transform_7, window_bounds = array<i64: 128, 64>}, {pipeline_mode = #tpu.pipeline_mode<synchronous>, transform_indices = @transform_8, window_bounds = array<i64: 128, 64>}, {transform_indices = @transform_9, window_bounds = array<i64: 1, 8, 64>}]} {
    %cst = arith.constant 0.000000e+00 : f32
    %0 = vector.broadcast %cst : f32 to vector<18x128xf32>
    %c0 = arith.constant 0 : index
    %c0_0 = arith.constant 0 : index
    %1 = vector.load %arg11[%c0, %c0_0] : memref<18x128xf32, #tpu.memory_space<vmem>>, vector<18x128xf32>
    tpu.vector_store %arg11[%c0, %c0_0], %0 {strides = array<i32>} : memref<18x128xf32, #tpu.memory_space<vmem>>, vector<18x128xf32>,
    %c0_1 = arith.constant 0 : index
    %c0_2 = arith.constant 0 : index
    %c0_3 = arith.constant 0 : index
    %2 = vector.load %arg1[%c0_1, %c0_2, %c0_3] : memref<1x16x64xf32, #tpu.memory_space<vmem>>, vector<1x16x64xf32>
    %3 = vector.shape_cast %2 : vector<1x16x64xf32> to vector<16x64xf32>
    %c1 = arith.constant 1 : index
    %c0_4 = arith.constant 0 : index
    %4 = vector.load %arg11[%c1, %c0_4] : memref<18x128xf32, #tpu.memory_space<vmem>>, vector<16x64xf32>
    tpu.vector_store %arg11[%c1, %c0_4], %3 {strides = array<i32>} : memref<18x128xf32, #tpu.memory_space<vmem>>, vector<16x64xf32>,
    %cst_5 = arith.constant 0.000000e+00 : f32
    %5 = vector.broadcast %cst_5 : f32 to vector<16x128xf32>
    %c0_6 = arith.constant 0 : index
    %c0_7 = arith.constant 0 : index
    %6 = vector.load %arg11[%c0_6, %c0_7] : memref<18x128xf32, #tpu.memory_space<vmem>>, vector<16x64xf32>
    %c0_8 = arith.constant 0 : index
    %c0_9 = arith.constant 0 : index
    %c0_10 = arith.constant 0 : index
    %7 = vector.load %arg2[%c0_8, %c0_9, %c0_10] : memref<3x64x128xf32, #tpu.memory_space<vmem>>, vector<1x64x128xf32>
    %8 = vector.shape_cast %7 : vector<1x64x128xf32> to vector<64x128xf32>
    %cst_11 = arith.constant dense<0.000000e+00> : vector<16x128xf32>
    %9 = tpu.matmul %6, %8, %cst_11 {dimension_numbers = #tpu.dot_dimension_numbers<[1], [0], [0], [1], [0, 0, 1, 1], [], []>} : vector<16x64xf32>, vector<64x128xf32>, vector<16x128xf32> -> vector<16x128xf32>
    %10 = arith.addf %5, %9 : vector<16x128xf32>
    %c1_12 = arith.constant 1 : index
    %c0_13 = arith.constant 0 : index
    %11 = vector.load %arg11[%c1_12, %c0_13] : memref<18x128xf32, #tpu.memory_space<vmem>>, vector<16x64xf32>
    %c1_14 = arith.constant 1 : index
    %c0_15 = arith.constant 0 : index
    %c0_16 = arith.constant 0 : index
    %12 = vector.load %arg2[%c1_14, %c0_15, %c0_16] : memref<3x64x128xf32, #tpu.memory_space<vmem>>, vector<1x64x128xf32>
    %13 = vector.shape_cast %12 : vector<1x64x128xf32> to vector<64x128xf32>
    %cst_17 = arith.constant dense<0.000000e+00> : vector<16x128xf32>
    %14 = tpu.matmul %11, %13, %cst_17 {dimension_numbers = #tpu.dot_dimension_numbers<[1], [0], [0], [1], [0, 0, 1, 1], [], []>} : vector<16x64xf32>, vector<64x128xf32>, vector<16x128xf32> -> vector<16x128xf32>
    %15 = arith.addf %10, %14 : vector<16x128xf32>
    %c2 = arith.constant 2 : index
    %c0_18 = arith.constant 0 : index
    %16 = vector.load %arg11[%c2, %c0_18] : memref<18x128xf32, #tpu.memory_space<vmem>>, vector<16x64xf32>
    %c2_19 = arith.constant 2 : index
    %c0_20 = arith.constant 0 : index
    %c0_21 = arith.constant 0 : index
    %17 = vector.load %arg2[%c2_19, %c0_20, %c0_21] : memref<3x64x128xf32, #tpu.memory_space<vmem>>, vector<1x64x128xf32>
    %18 = vector.shape_cast %17 : vector<1x64x128xf32> to vector<64x128xf32>
    %cst_22 = arith.constant dense<0.000000e+00> : vector<16x128xf32>
    %19 = tpu.matmul %16, %18, %cst_22 {dimension_numbers = #tpu.dot_dimension_numbers<[1], [0], [0], [1], [0, 0, 1, 1], [], []>} : vector<16x64xf32>, vector<64x128xf32>, vector<16x128xf32> -> vector<16x128xf32>
    %20 = arith.addf %15, %19 : vector<16x128xf32>
    %c0_23 = arith.constant 0 : index
    %c0_24 = arith.constant 0 : index
    %21 = vector.load %arg4[%c0_23, %c0_24] : memref<1x128xf32, #tpu.memory_space<vmem>>, vector<1x128xf32>
    %22 = vector.broadcast %21 : vector<1x128xf32> to vector<16x128xf32>
    %23 = arith.addf %20, %22 : vector<16x128xf32>
    %cst_25 = arith.constant 0.000000e+00 : f32
    %24 = vector.broadcast %cst_25 : f32 to vector<16x128xf32>
    %25 = arith.maximumf %23, %24 : vector<16x128xf32>
    %c1_26 = arith.constant 1 : index
    %c0_27 = arith.constant 0 : index
    %26 = vector.load %arg11[%c1_26, %c0_27] : memref<18x128xf32, #tpu.memory_space<vmem>>, vector<16x128xf32>
    tpu.vector_store %arg11[%c1_26, %c0_27], %25 {strides = array<i32>} : memref<18x128xf32, #tpu.memory_space<vmem>>, vector<16x128xf32>,
    %cst_28 = arith.constant 0.000000e+00 : f32
    %27 = vector.broadcast %cst_28 : f32 to vector<16x128xf32>
    %c0_29 = arith.constant 0 : index
    %c0_30 = arith.constant 0 : index
    %28 = vector.load %arg11[%c0_29, %c0_30] : memref<18x128xf32, #tpu.memory_space<vmem>>, vector<16x128xf32>
    %c0_31 = arith.constant 0 : index
    %c0_32 = arith.constant 0 : index
    %c0_33 = arith.constant 0 : index
    %29 = vector.load %arg3[%c0_31, %c0_32, %c0_33] : memref<3x128x128xf32, #tpu.memory_space<vmem>>, vector<1x128x128xf32>
    %30 = vector.shape_cast %29 : vector<1x128x128xf32> to vector<128x128xf32>
    %cst_34 = arith.constant dense<0.000000e+00> : vector<16x128xf32>
    %31 = tpu.matmul %28, %30, %cst_34 {dimension_numbers = #tpu.dot_dimension_numbers<[1], [0], [0], [1], [0, 0, 1, 1], [], []>} : vector<16x128xf32>, vector<128x128xf32>, vector<16x128xf32> -> vector<16x128xf32>
    %32 = arith.addf %27, %31 : vector<16x128xf32>
    %c1_35 = arith.constant 1 : index
    %c0_36 = arith.constant 0 : index
    %33 = vector.load %arg11[%c1_35, %c0_36] : memref<18x128xf32, #tpu.memory_space<vmem>>, vector<16x128xf32>
    %c1_37 = arith.constant 1 : index
    %c0_38 = arith.constant 0 : index
    %c0_39 = arith.constant 0 : index
    %34 = vector.load %arg3[%c1_37, %c0_38, %c0_39] : memref<3x128x128xf32, #tpu.memory_space<vmem>>, vector<1x128x128xf32>
    %35 = vector.shape_cast %34 : vector<1x128x128xf32> to vector<128x128xf32>
    %cst_40 = arith.constant dense<0.000000e+00> : vector<16x128xf32>
    %36 = tpu.matmul %33, %35, %cst_40 {dimension_numbers = #tpu.dot_dimension_numbers<[1], [0], [0], [1], [0, 0, 1, 1], [], []>} : vector<16x128xf32>, vector<128x128xf32>, vector<16x128xf32> -> vector<16x128xf32>
    %37 = arith.addf %32, %36 : vector<16x128xf32>
    %c2_41 = arith.constant 2 : index
    %c0_42 = arith.constant 0 : index
    %38 = vector.load %arg11[%c2_41, %c0_42] : memref<18x128xf32, #tpu.memory_space<vmem>>, vector<16x128xf32>
    %c2_43 = arith.constant 2 : index
    %c0_44 = arith.constant 0 : index
    %c0_45 = arith.constant 0 : index
    %39 = vector.load %arg3[%c2_43, %c0_44, %c0_45] : memref<3x128x128xf32, #tpu.memory_space<vmem>>, vector<1x128x128xf32>
    %40 = vector.shape_cast %39 : vector<1x128x128xf32> to vector<128x128xf32>
    %cst_46 = arith.constant dense<0.000000e+00> : vector<16x128xf32>
    %41 = tpu.matmul %38, %40, %cst_46 {dimension_numbers = #tpu.dot_dimension_numbers<[1], [0], [0], [1], [0, 0, 1, 1], [], []>} : vector<16x128xf32>, vector<128x128xf32>, vector<16x128xf32> -> vector<16x128xf32>
    %42 = arith.addf %37, %41 : vector<16x128xf32>
    %c0_47 = arith.constant 0 : index
    %c0_48 = arith.constant 0 : index
    %43 = vector.load %arg5[%c0_47, %c0_48] : memref<1x128xf32, #tpu.memory_space<vmem>>, vector<1x128xf32>
    %44 = vector.broadcast %43 : vector<1x128xf32> to vector<16x128xf32>
    %45 = arith.addf %42, %44 : vector<16x128xf32>
    %cst_49 = arith.constant 0.000000e+00 : f32
    %46 = vector.broadcast %cst_49 : f32 to vector<16x128xf32>
    %47 = arith.maximumf %45, %46 : vector<16x128xf32>
    %c0_50 = arith.constant 0 : index
    %c0_51 = arith.constant 0 : index
    %48 = vector.load %arg6[%c0_50, %c0_51] : memref<8x16xf32, #tpu.memory_space<vmem>>, vector<8x16xf32>
    %cst_52 = arith.constant dense<0.000000e+00> : vector<8x128xf32>
    %49 = tpu.matmul %48, %47, %cst_52 {dimension_numbers = #tpu.dot_dimension_numbers<[1], [0], [0], [1], [0, 0, 1, 1], [], []>} : vector<8x16xf32>, vector<16x128xf32>, vector<8x128xf32> -> vector<8x128xf32>
    %c0_53 = arith.constant 0 : index
    %c0_54 = arith.constant 0 : index
    %50 = vector.load %arg7[%c0_53, %c0_54] : memref<8x16xf32, #tpu.memory_space<vmem>>, vector<8x16xf32>
    %cst_55 = arith.constant dense<0.000000e+00> : vector<8x128xf32>
    %51 = tpu.matmul %50, %47, %cst_55 {dimension_numbers = #tpu.dot_dimension_numbers<[1], [0], [0], [1], [0, 0, 1, 1], [], []>} : vector<8x16xf32>, vector<16x128xf32>, vector<8x128xf32> -> vector<8x128xf32>
    %52 = arith.maximumf %49, %51 : vector<8x128xf32>
    %c0_56 = arith.constant 0 : index
    %c0_57 = arith.constant 0 : index
    %53 = vector.load %arg8[%c0_56, %c0_57] : memref<128x64xf32, #tpu.memory_space<vmem>>, vector<128x64xf32>
    %cst_58 = arith.constant dense<0.000000e+00> : vector<8x64xf32>
    %54 = tpu.matmul %52, %53, %cst_58 {dimension_numbers = #tpu.dot_dimension_numbers<[1], [0], [0], [1], [0, 0, 1, 1], [], []>} : vector<8x128xf32>, vector<128x64xf32>, vector<8x64xf32> -> vector<8x64xf32>
    %c0_59 = arith.constant 0 : index
    %c0_60 = arith.constant 0 : index
    %55 = vector.load %arg9[%c0_59, %c0_60] : memref<128x64xf32, #tpu.memory_space<vmem>>, vector<128x64xf32>
    %cst_61 = arith.constant dense<0.000000e+00> : vector<8x64xf32>
    %56 = tpu.matmul %52, %55, %cst_61 {dimension_numbers = #tpu.dot_dimension_numbers<[1], [0], [0], [1], [0, 0, 1, 1], [], []>} : vector<8x128xf32>, vector<128x64xf32>, vector<8x64xf32> -> vector<8x64xf32>
    %57 = arith.maximumf %54, %56 : vector<8x64xf32>
    %c0_62 = arith.constant 0 : index
    %c0_63 = arith.constant 0 : index
    %c0_64 = arith.constant 0 : index
    %58 = vector.load %arg10[%c0_62, %c0_63, %c0_64] : memref<1x8x64xf32, #tpu.memory_space<vmem>>, vector<1x8x64xf32>
    %59 = vector.shape_cast %58 : vector<1x8x64xf32> to vector<8x64xf32>
    %60 = vector.shape_cast %57 : vector<8x64xf32> to vector<1x8x64xf32>
    tpu.vector_store %arg10[%c0_62, %c0_63, %c0_64], %60 {strides = array<i32>} : memref<1x8x64xf32, #tpu.memory_space<vmem>>, vector<1x8x64xf32>,
    return
  }
  func.func @transform_0(%arg0: i32) -> (i32, i32, i32) {
    %c0_i32 = arith.constant 0 : i32
    %c0_i32_0 = arith.constant 0 : i32
    %c0_i32_1 = arith.constant 0 : i32
    return %arg0, %c0_i32, %c0_i32_0 : i32, i32, i32
  }
  func.func @transform_1(%arg0: i32) -> (i32, i32, i32) {
    %c0_i32 = arith.constant 0 : i32
    %c0_i32_0 = arith.constant 0 : i32
    %c0_i32_1 = arith.constant 0 : i32
    %c0_i32_2 = arith.constant 0 : i32
    return %c0_i32, %c0_i32_0, %c0_i32_1 : i32, i32, i32
  }
  func.func @transform_2(%arg0: i32) -> (i32, i32, i32) {
    %c0_i32 = arith.constant 0 : i32
    %c0_i32_0 = arith.constant 0 : i32
    %c0_i32_1 = arith.constant 0 : i32
    %c0_i32_2 = arith.constant 0 : i32
    return %c0_i32, %c0_i32_0, %c0_i32_1 : i32, i32, i32
  }
  func.func @transform_3(%arg0: i32) -> (i32, i32) {
    %c0_i32 = arith.constant 0 : i32
    %c0_i32_0 = arith.constant 0 : i32
    %c0_i32_1 = arith.constant 0 : i32
    return %c0_i32, %c0_i32_0 : i32, i32
  }
  func.func @transform_4(%arg0: i32) -> (i32, i32) {
    %c0_i32 = arith.constant 0 : i32
    %c0_i32_0 = arith.constant 0 : i32
    %c0_i32_1 = arith.constant 0 : i32
    return %c0_i32, %c0_i32_0 : i32, i32
  }
  func.func @transform_5(%arg0: i32) -> (i32, i32) {
    %c0_i32 = arith.constant 0 : i32
    %c0_i32_0 = arith.constant 0 : i32
    %c0_i32_1 = arith.constant 0 : i32
    return %c0_i32, %c0_i32_0 : i32, i32
  }
  func.func @transform_6(%arg0: i32) -> (i32, i32) {
    %c0_i32 = arith.constant 0 : i32
    %c0_i32_0 = arith.constant 0 : i32
    %c0_i32_1 = arith.constant 0 : i32
    return %c0_i32, %c0_i32_0 : i32, i32
  }
  func.func @transform_7(%arg0: i32) -> (i32, i32) {
    %c0_i32 = arith.constant 0 : i32
    %c0_i32_0 = arith.constant 0 : i32
    %c0_i32_1 = arith.constant 0 : i32
    return %c0_i32, %c0_i32_0 : i32, i32
  }
  func.func @transform_8(%arg0: i32) -> (i32, i32) {
    %c0_i32 = arith.constant 0 : i32
    %c0_i32_0 = arith.constant 0 : i32
    %c0_i32_1 = arith.constant 0 : i32
    return %c0_i32, %c0_i32_0 : i32, i32
  }
  func.func @transform_9(%arg0: i32) -> (i32, i32, i32) {
    %c0_i32 = arith.constant 0 : i32
    %c0_i32_0 = arith.constant 0 : i32
    %c0_i32_1 = arith.constant 0 : i32
    return %arg0, %c0_i32, %c0_i32_0 : i32, i32, i32
  }
}

</mosaic_0001>

<bundles_post_ra>
// kernel: tpu_custom_call.1
= control target key start
LH: loop header
LB: loop body
LE: loop exit
PB: predicated region body
PF: predicated region fallthrough
CT: control target
= control target key end

     0   :  { %14 = vsyncpa [#allocation4], 0  ;;  %s2756_s0 = inlined_call_operand.hbm [shape: f32[2,16,64], index: 0, kind: input, shape index: {}]   ;;  %s2757_s1 = inlined_call_operand.hbm [shape: f32[3,64,128], index: 1, kind: input, shape index: {}]   ;;  %s2758_s2 = inlined_call_operand.vmem [shape: f32[3,128,128], index: 2, kind: input, shape index: {}]   ;;  %s2759_s3 = inlined_call_operand.vmem [shape: f32[1,128], index: 3, kind: input, shape index: {}]   ;;  %s2760_s4 = inlined_call_operand.vmem [shape: f32[1,128], index: 4, kind: input, shape index: {}]   ;;  %s2761_s5 = inlined_call_operand.vmem [shape: f32[8,16], index: 5, kind: input, shape index: {}]   ;;  %s2762_s6 = inlined_call_operand.vmem [shape: f32[8,16], index: 6, kind: input, shape index: {}]   ;;  %s2763_s7 = inlined_call_operand.vmem [shape: f32[128,64], index: 7, kind: input, shape index: {}]   ;;  %s2764_s8 = inlined_call_operand.vmem [shape: f32[128,64], index: 8, kind: input, shape index: {}]   ;;  %s2765_s9 = inlined_call_operand.hbm [shape: f32[2,8,64], index: 9, kind: output, shape index: {}]  }
   0x1   :  { %16 = vsyncpa [#allocation4 + $0x1], 0 }
   0x2   :  { %17 = vsyncpa [#allocation7], 0 }
   0x3   :  { %18 = vsyncpa [#allocation5], 0 }
   0x4   :  { %20 = vsyncpa [#allocation5 + $0x1], 0  ;;  %s2260_s30 = smov 0   ;;  %s2262_s10 = smov 0  }
   0x5   :  { %s2264_s11 = smov 0   ;;  %s2266_s12 = smov 0  }
   0x6 LB: > { %s2281_s13 = sadd.s32 4294967295, %s2200_s12   ;;  %s1376_s14 = sadd.s32 4294967294, %s2200_s12   ;;  %s2200_s12 = sphi %s2266_s12, %s2790_s12   ;;  %s2196_s11 = sphi %s2264_s11, %s2793_s11   ;;  %s2192_s10 = sphi %s2262_s10, %s2792_s10   ;;  %s2188_s30 = sphi %s2260_s30, %s2791_s30  }
   0x7   : > { %p46_p0 = scmp.ne.s32.totalorder %s2192_s10, %s2188_s30  ;;  %p2766_p1 = scmp.eq.s32.totalorder %s2281_s13, 0 }
   0x8   : > { %p244_p3 = scmp.eq.s32.totalorder %s1376_s14, 1  ;;  %p1377_p5 = scmp.ge.s32.totalorder %s2200_s12, 1 }
   0x9   : > { %p2290_p4 = por %p2766_p1, %p46_p0  ;;  %p251_p7 = scmp.lt.s32.totalorder %s2200_s12, 3 }
   0xa   : > { %p2295_p6 = por %p244_p3, %p46_p0  ;;  %s2202_s18 = smov [#allocation6]  }
   0xb   : > { %s2773_s15 = scalar_select %p2290_p4, 1, 0 }
   0xc   : > { %s2774_s16 = scalar_select %p2295_p6, 1, 0 }
   0xd   : > { %p2300_p8 = pnand %p1377_p5, %p251_p7  ;;  %s263_s19 = sshll.u32 %s2202_s18, 4  ;;  %s2304_s19 = int_to_ptr.vmem [resolvable:$true] %s263_s19 }
   0xe   : > { %2775 = sst [smem:[#allocation12_spill]] %s2774_s16  ;;  %s2316_s21 = sadd.s32 1, %s2200_s12  }
   0xf   : > { %s2776_s17 = scalar_select %p2300_p8, 1, 0 }
  0x10   : > { %p2018_p9 = pneg %p2300_p8  ;;  %2778 = sst [smem:[#allocation13_spill]] %s2316_s21 }
  0x11   : > { %s33_s22 = sadd.s32 1, %s2196_s11  ;;  %s30_s23 = ssub.s32 %s2200_s12, %s2316_s21 }
  0x12   : > { %p2311_p11 = pnand %p2018_p9, %p2766_p1  ;;  %s2072_s26 = scalar_lea.hbm %s2757_s1, 3072 }
  0x13   : > { %p2073_p12 = scmp.ne.s32.totalorder %s2757_s1, %s2072_s26  ;;  %p2079_p5 = scmp.lt.u32.totalorder %s2072_s26, %s2757_s1 }
  0x14   : > { %p2074_p13 = pneg %p2311_p11 }
  0x16   : > { %p2075_p0 = pnand %p2074_p13, %p2073_p12 }
  0x18   : > { %p2076_p3 = pneg %p2075_p0 }
  0x1a   : > { %p2081_p7 = pnand %p2079_p5, %p2076_p3 }
  0x1c   : > { %2084 = shalt.err (!%p2081_p7)
}
  0x1d   : > { %s2085_s18 = scalar_lea.vmem %s2304_s19, 3072  ;;  %p2093_p2 = scmp.lt.s32.totalorder %s2304_s19, %s2304_s19 }
  0x1e   : > { %p2086_p9 = scmp.ne.s32.totalorder %s2304_s19, %s2085_s18  ;;  %p2094_p6 = scmp.lt.s32.totalorder %s2085_s18, %s2085_s18 }
  0x20   : > { %p2088_p10 = pnand %p2086_p9, %p2074_p13  ;;  %p2095_p4 = por %p2094_p6, %p2093_p2 }
  0x22   : > { %p2089_p1 = pneg %p2088_p10 }
  0x24   : > { %p2096_p8 = pnand %p2095_p4, %p2089_p1 }
  0x26   : > { %2099 = shalt.err (!%p2096_p8)
}
  0x27   : > { %s2772_s24 = smov 128   ;;  %s2204_s25 = smov 8  }
  0x28   : > { %2021 = dma.hbm_to_vmem [thread:$0]  (!%p2311_p11), %s2757_s1, 3072, %s2304_s19, [#allocation7], %s2772_s24, %s2772_s24, %s2204_s25  }
  0x29   : > { %p31_p1 = scmp.eq.s32.totalorder %s30_s23, 0  ;;  %p40_p2 = scmp.ne.s32.totalorder %s2196_s11, %s2192_s10 }
  0x2a   : > { %p41_p4 = scmp.eq.s32.totalorder %s2200_s12, 0  ;;  %p2031_p6 = scmp.lt.s32.totalorder %s2200_s12, 2 }
  0x2b   : > { %s2350_s28 = scalar_select %p31_p1, %s2196_s11, %s33_s22  }
  0x2c   : > { %p42_p8 = por %p41_p4, %p40_p2  ;;  %p2779_p10 = scmp.eq.s32.totalorder %s2281_s13, 1 }
  0x2d   : > { %s298_s20 = sand.u32 1, %s2196_s11   ;;  %s1433_s14 = sshll.u32 %s2200_s12, 8 }
  0x2e   : > { %p2354_p12 = por %p2779_p10, %p40_p2  ;;  %s1380_s18 = sshll.u32 %s298_s20, 4 }
  0x2f   : > { %s2363_s26 = scalar_lea.hbm %s2756_s0, %s1433_s14  ;;  %s302_s19 = scalar_lea.vmem [#allocation3], %s1380_s18 }
  0x30   : > { %s309_s22 = sshll.u32 %s302_s19, 4  ;;  %p2365_p11 = pnand %p2031_p6, %p42_p8  ;;  %s2369_s22 = int_to_ptr.vmem [resolvable:$true] %s309_s22 }
  0x31   : > { %s2371_s27 = scalar_lea.sflag [#allocation4], %s298_s20  ;;  %s2100_s24 = scalar_lea.hbm %s2363_s26, 256 }
  0x32   : > { %p2101_p13 = scmp.ne.s32.totalorder %s2363_s26, %s2100_s24  ;;  %p2102_p0 = pneg %p2365_p11 }
  0x33   : > { %s2105_s14 = scalar_lea.hbm %s2756_s0, 512  ;;  %p2106_p7 = scmp.lt.u32.totalorder %s2363_s26, %s2756_s0 }
  0x34   : > { %p2103_p3 = pnand %p2102_p0, %p2101_p13  ;;  %p2107_p9 = scmp.lt.u32.totalorder %s2105_s14, %s2100_s24 }
  0x35   : > { %p2109_p2 = scmp.lt.u32.totalorder %s2100_s24, %s2363_s26 }
  0x36   : > { %p2104_p5 = pneg %p2103_p3  ;;  %p2108_p1 = por %p2107_p9, %p2106_p7 }
  0x38   : > { %p2110_p4 = por %p2109_p2, %p2108_p1 }
  0x3a   : > { %p2111_p6 = pnand %p2110_p4, %p2104_p5 }
  0x3c   : > { %2114 = shalt.err (!%p2111_p6)
}
  0x3d   : > { %s2115_s20 = scalar_lea.vmem %s2369_s22, 256  ;;  %s2205_s16 = smov [#allocation3]  }
  0x3e   : > { %p2116_p8 = scmp.ne.s32.totalorder %s2369_s22, %s2115_s20  ;;  %s2120_s21 = sshll.u32 %s2205_s16, 4  ;;  %s2121_s21 = int_to_ptr.vmem [resolvable:$false] %s2120_s21 }
  0x3f   : > { %s2122_s18 = scalar_lea.vmem %s2121_s21, 512  ;;  %p2123_p3 = scmp.lt.s32.totalorder %s2369_s22, %s2121_s21 }
  0x40   : > { %p2118_p10 = pnand %p2116_p8, %p2102_p0  ;;  %p2124_p7 = scmp.lt.s32.totalorder %s2122_s18, %s2115_s20 }
  0x42   : > { %p2119_p13 = pneg %p2118_p10  ;;  %p2125_p9 = por %p2124_p7, %p2123_p3 }
  0x44   : > { %p2126_p1 = pnand %p2125_p9, %p2119_p13 }
  0x46   : > { %2129 = shalt.err (!%p2126_p1)
}
  0x47   : > { %s2782_s24 = smov 128   ;;  %p2783_p0 = scmp.ne.s32.totalorder %s2776_s17, 0 }
  0x48   : > { %2025 = dma.hbm_to_vmem [thread:$0]  (!%p2365_p11), %s2363_s26, 256, %s2369_s22, %s2371_s27, %s2782_s24, %s2782_s24, %s2204_s25  }
  0x49   : > { %321 = sbr.rel (%p2783_p0) target bundleno = 1103 (0x44f), region = 56  ;;  %s2405_s14 = sand.u32 (!%p2783_p0), 1, %s2192_s10  }
  0x4a   : > { %s1384_s19 = sshll.u32 (!%p2783_p0), %s2405_s14, 4  ;;  %s324_s20 = scalar_lea.sflag (!%p2783_p0), [#allocation4], %s2405_s14 }
  0x4b   : > { %s327_s16 = scalar_lea.vmem (!%p2783_p0), [#allocation3], %s1384_s19  ;;  %p2784_p5 = scmp.ne.s32.totalorder (!%p2783_p0), %s2773_s15, 0 }
  0x50   : > { %2175 = dma.done.wait (%p2784_p5), %s324_s20, 256  }
  0x51   : > { %2177 = vsyncadd (%p2784_p5), %s324_s20, 4294967040  ;;  %p2785_p2 = scmp.eq.s32.totalorder %s2281_s13, 0 }
  0x53   : > { %2179 = dma.done.wait (%p2785_p2), [#allocation7], 3072   ;;  %p2786_p11 = pmov %p2785_p2 }
  0x54   : > { %v2206_v0 = vmov 0.0   ;;  %v376_v1 = vld [vmem:[#allocation6] sm:$0xff]  ;;  %v377_v2 = vld [vmem:[#allocation6 + $0x8] sm:$0xff]  ;;  %v378_v3 = vld [vmem:[#allocation6 + $0x10] sm:$0xff]  ;;  %vm371_vm0 = vcmask 523264   ;;  %vm2208_vm1 = vmmov 0  }
  0x55   : > { %2181 = vsyncadd (%p2786_p11), [#allocation7], 4294964224  ;;  %366 = vst [vmem:[#allocation2] sm:$0xff] %v2206_v0  ;;  %v1820_v4 = vpack.c.bf16 %v377_v2, %v376_v1  ;;  %v379_v5 = vld [vmem:[#allocation6 + $0x18] sm:$0xff]  ;;  %v380_v7 = vld [vmem:[#allocation6 + $0x20] sm:$0xff]  ;;  %vm959_vm2 = vcmask 130048  }
  0x56   : > { %367 = vst [vmem:[#allocation2 + $0x8] sm:$0xff] %v2206_v0  ;;  %368 = vst [vmem:[#allocation2 + $0x10] sm:$0x3] %v2206_v0  ;;  %v1824_v6 = vpack.c.bf16 %v379_v5, %v378_v3  ;;  %v381_v8 = vld [vmem:[#allocation6 + $0x28] sm:$0xff]  ;;  %v387_v9 = vld [vmem:[#allocation6 + $0x40] sm:$0xff]  ;;  %s1430_s15 = sshll.u32 %s2281_s13, 7 }
  0x57   : > { %1821 = vmatprep.subr.bf16.mxu0 %v1820_v4  ;;  %v388_v10 = vld [vmem:[#allocation6 + $0x48] sm:$0xff]  ;;  %v369_v11 = vld [vmem:[%s327_s16] sm:$0xff]  ;;  %v1828_v15 = vpack.c.bf16 %v381_v8, %v380_v7  ;;  %v390_v17 = vld [vmem:[#allocation6 + $0x58] sm:$0xff]  ;;  %s2711_s23 = scalar_lea.hbm %s2765_s9, %s1430_s15  ;;  %s1283_s27 = scalar_lea.sflag [#allocation5], %s2405_s14 }
  0x58   : > { %1823 = vmatpush3.bf16.msra.mxu0 %v1820_v4  ;;  %v1804_v12 = vpack.c.bf16 %v388_v10, %v387_v9  ;;  %372 = vst.msk [vmem:[#allocation2 + $0x1] sm:$0xff] %vm371_vm0, %v369_v11  ;;  %v370_v13 = vld [vmem:[%s327_s16 + $0x8] sm:$0xff]  ;;  %v389_v14 = vld [vmem:[#allocation6 + $0x50] sm:$0xff]  ;;  %v391_v20 = vld [vmem:[#allocation6 + $0x60] sm:$0xff]  ;;  %s1386_s16 = sshll.u32 %s2405_s14, 3  ;;  %s2209_s13 = smov [#allocation8]  }
  0x59   : > { %1825 = vmatprep.subr.bf16.mxu0 %v1824_v6  ;;  %v382_v16 = vld [vmem:[#allocation6 + $0x30] sm:$0xff]  ;;  %373 = vst.msk [vmem:[#allocation2 + $0x9] sm:$0xff] %vm371_vm0, %v370_v13  ;;  %v383_v18 = vld [vmem:[#allocation6 + $0x38] sm:$0xff]  ;;  %v1808_v19 = vpack.c.bf16 %v390_v17, %v389_v14  ;;  %v392_v21 = vld [vmem:[#allocation6 + $0x68] sm:$0xff]  ;;  %s365_s17 = scalar_lea.vmem [#allocation8], %s1386_s16  ;;  %s2134_s18 = sshll.u32 %s2209_s13, 4  ;;  %s2135_s18 = int_to_ptr.vmem [resolvable:$false] %s2134_s18 }
  0x5a   : > { %1805 = vmatprep.subr.bf16.mxu1 %v1804_v12  ;;  %v1832_v22 = vpack.c.bf16 %v383_v18, %v382_v16  ;;  %v1812_v23 = vpack.c.bf16 %v392_v21, %v391_v20  ;;  %v393_v24 = vld [vmem:[#allocation6 + $0x70] sm:$0xff]  ;;  %v394_v25 = vld [vmem:[#allocation6 + $0x78] sm:$0xff]  ;;  %v560_v26 = vld [vmem:[#allocation6 + $0x80] sm:$0xff]  ;;  %s1296_s25 = sshll.u32 %s365_s17, 4  ;;  %s2136_s24 = scalar_lea.vmem %s2135_s18, 256  ;;  %s2713_s25 = int_to_ptr.vmem [resolvable:$true] %s1296_s25 }
  0x5b   : > { %1807 = vmatpush3.bf16.msra.mxu1 %v1804_v12  ;;  %v561_v27 = vld [vmem:[#allocation6 + $0x88] sm:$0xff]  ;;  %v1816_v30 = vpack.c.bf16 %v394_v25, %v393_v24  ;;  %v562_v32 = vld [vmem:[#allocation6 + $0x90] sm:$0xff]  ;;  %v563_v33 = vld [vmem:[#allocation6 + $0x98] sm:$0xff]  ;;  %s2130_s21 = scalar_lea.vmem %s2713_s25, 128  ;;  %p2137_p10 = scmp.lt.s32.totalorder %s2713_s25, %s2135_s18 }
  0x5c   : > { %1827 = vmatpush3.bf16.msra.mxu0 %v1824_v6  ;;  %1809 = vmatprep.subr.bf16.mxu1 %v1808_v19  ;;  %v1836_v31 = vpack.c.bf16 %v561_v27, %v560_v26  ;;  %v1394_v34 = vld [vmem:[%s2758_s2 + $0x80] sm:$0xff]  ;;  %v1395_v35 = vld [vmem:[%s2758_s2 + $0x88] sm:$0xff]  ;;  %v1840_v37 = vpack.c.bf16 %v563_v33, %v562_v32  ;;  %v1396_v40 = vld [vmem:[%s2758_s2 + $0x90] sm:$0xff]  ;;  %p2131_p4 = scmp.ne.s32.totalorder %s2713_s25, %s2130_s21  ;;  %p2138_p13 = scmp.lt.s32.totalorder %s2136_s24, %s2130_s21 }
  0x5d   : > { %1829 = vmatprep.subr.bf16.mxu0 %v1828_v15  ;;  %v1852_v39 = vpack.c.bf16 %v1395_v35, %v1394_v34  ;;  %v1397_v41 = vld [vmem:[%s2758_s2 + $0x98] sm:$0xff]  ;;  %v565_v43 = vld [vmem:[#allocation6 + $0xa8] sm:$0xff]  ;;  %v1399_v48 = vld [vmem:[%s2758_s2 + $0xa8] sm:$0xff] }
  0x5e   : > { %v564_v42 = vld [vmem:[#allocation6 + $0xa0] sm:$0xff]  ;;  %v1856_v45 = vpack.c.bf16 %v1397_v41, %v1396_v40  ;;  %v1398_v47 = vld [vmem:[%s2758_s2 + $0xa0] sm:$0xff]  ;;  %v566_v49 = vld [vmem:[#allocation6 + $0xb0] sm:$0xff]  ;;  %p2132_p6 = pnand %p2131_p4, %p2354_p12  ;;  %p2139_p3 = por %p2138_p13, %p2137_p10 }
  0x5f   : > { %v374_v28 = vld [vmem:[#allocation2] sm:$0xff]  ;;  %1811 = vmatpush3.bf16.msra.mxu1 %v1808_v19  ;;  %v1844_v46 = vpack.c.bf16 %v565_v43, %v564_v42  ;;  %v567_v50 = vld [vmem:[#allocation6 + $0xb8] sm:$0xff]  ;;  %v1860_v51 = vpack.c.bf16 %v1399_v48, %v1398_v47  ;;  %v1401_v54 = vld [vmem:[%s2758_s2 + $0xb8] sm:$0xff] }
  0x60   : > { %v384_v29 = vld [vmem:[#allocation2 + $0x1] sm:$0xff]  ;;  %1831 = vmatpush3.bf16.msra.mxu0 %v1828_v15  ;;  %1593 = vmatprep.mubr.msk.f32.mxu0 %vm371_vm0, %v374_v28  ;;  %v385_v44 = vld [vmem:[#allocation2 + $0x9] sm:$0xff]  ;;  %v1848_v52 = vpack.c.bf16 %v567_v50, %v566_v49  ;;  %v1405_v61 = vld [vmem:[%s2758_s2 + $0xd8] sm:$0xff]  ;;  %p2133_p8 = pneg %p2132_p6 }
  0x61   : > { %1833 = vmatprep.subr.bf16.mxu0 %v1832_v22  ;;  %1813 = vmatprep.subr.bf16.mxu1 %v1812_v23  ;;  %v375_v36 = vld [vmem:[#allocation2 + $0x8] sm:$0xff]  ;;  %v1400_v53 = vld [vmem:[%s2758_s2 + $0xb0] sm:$0xff]  ;;  %v1402_v57 = vld [vmem:[%s2758_s2 + $0xc0] sm:$0xff] }
  0x62   : > { %1574 = vmatprep.mubr.msk.f32.mxu1 %vm371_vm0, %v384_v29  ;;  %v557_v38 = vld [vmem:[#allocation2 + $0x2] sm:$0xff]  ;;  %v1864_v55 = vpack.c.bf16 %v1401_v54, %v1400_v53  ;;  %v558_v56 = vld [vmem:[#allocation2 + $0xa] sm:$0xff]  ;;  %v1409_v4 = vld [vmem:[%s2758_s2 + $0xf8] sm:$0xff]  ;;  %p2140_p7 = pnand %p2139_p3, %p2133_p8 }
  0x63   : > { %1815 = vmatpush3.bf16.msra.mxu1 %v1812_v23  ;;  %v1403_v58 = vld [vmem:[%s2758_s2 + $0xc8] sm:$0xff]  ;;  %v1404_v60 = vld [vmem:[%s2758_s2 + $0xd0] sm:$0xff]  ;;  %v1406_v63 = vld [vmem:[%s2758_s2 + $0xe0] sm:$0xff] }
  0x64   : > { %1835 = vmatpush3.bf16.msra.mxu0 %v1832_v22  ;;  %1817 = vmatprep.subr.bf16.mxu1 %v1816_v30  ;;  %v1868_v59 = vpack.c.bf16 %v1403_v58, %v1402_v57  ;;  %v1872_v62 = vpack.c.bf16 %v1405_v61, %v1404_v60  ;;  %v1407_v1 = vld [vmem:[%s2758_s2 + $0xe8] sm:$0xff]  ;;  %v1408_v3 = vld [vmem:[%s2758_s2 + $0xf0] sm:$0xff]  ;;  %v666_v6 = vld [vmem:[%s2758_s2] sm:$0xff] }
  0x65   : > { %1837 = vmatprep.subr.bf16.mxu0 %v1836_v31  ;;  %v1876_v2 = vpack.c.bf16 %v1407_v1, %v1406_v63  ;;  %v1880_v5 = vpack.c.bf16 %v1409_v4, %v1408_v3  ;;  %v667_v7 = vld [vmem:[%s2758_s2 + $0x8] sm:$0xff]  ;;  %v1393_v12 = vld [vmem:[%s2759_s3] ss:$0 sm:$0xff]  ;;  %v668_v18 = vld [vmem:[%s2758_s2 + $0x10] sm:$0xff] }
  0x66   : > { %v1884_v8 = vpack.c.bf16 %v667_v7, %v666_v6  ;;  %v669_v19 = vld [vmem:[%s2758_s2 + $0x18] sm:$0xff]  ;;  %v670_v23 = vld [vmem:[%s2758_s2 + $0x20] sm:$0xff]  ;;  %v671_v24 = vld [vmem:[%s2758_s2 + $0x28] sm:$0xff]  ;;  %v2207_v6 = vmov 0.0|0.0  }
  0x67   : > { %1594 = vmatmul.mubr.msk.f32.vlgmr.msra.gmra.mrb[0].mxu0 %vm371_vm0, %v375_v36  ;;  %1819 = vmatpush3.bf16.msra.mxu1 %v1816_v30  ;;  %v1888_v22 = vpack.c.bf16 %v669_v19, %v668_v18  ;;  %v1892_v25 = vpack.c.bf16 %v671_v24, %v670_v23  ;;  %v672_v26 = vld [vmem:[%s2758_s2 + $0x30] sm:$0xff]  ;;  %v673_v27 = vld [vmem:[%s2758_s2 + $0x38] sm:$0xff]  ;;  %v674_v30 = vld [vmem:[%s2758_s2 + $0x40] sm:$0xff] }
  0x68   : > { %1839 = vmatpush3.bf16.msra.mxu0 %v1836_v31  ;;  %1612 = vmatprep.mubr.msk.f32.mxu0 %vm371_vm0, %v557_v38  ;;  %v1896_v29 = vpack.c.bf16 %v673_v27, %v672_v26  ;;  %v675_v31 = vld [vmem:[%s2758_s2 + $0x48] sm:$0xff]  ;;  %v676_v33 = vld [vmem:[%s2758_s2 + $0x50] sm:$0xff]  ;;  %v677_v34 = vld [vmem:[%s2758_s2 + $0x58] sm:$0xff] }
  0x69   : > { %1841 = vmatprep.subr.bf16.mxu0 %v1840_v37  ;;  %1853 = vmatprep.subr.bf16.mxu1 %v1852_v39  ;;  %v1900_v32 = vpack.c.bf16 %v675_v31, %v674_v30  ;;  %v1904_v35 = vpack.c.bf16 %v677_v34, %v676_v33  ;;  %v678_v36 = vld [vmem:[%s2758_s2 + $0x60] sm:$0xff]  ;;  %v681_v40 = vld [vmem:[%s2758_s2 + $0x78] sm:$0xff]  ;;  %v1411_v43 = vld [vmem:[%s2758_s2 + $0x108] sm:$0xff] }
  0x6a   : > { %1575 = vmatmul.mubr.msk.f32.vlgmr.msra.gmra.mrb[0].mxu1 %vm371_vm0, %v385_v44  ;;  %v1410_v42 = vld [vmem:[%s2758_s2 + $0x100] sm:$0xff]  ;;  %v1415_v50 = vld [vmem:[%s2758_s2 + $0x128] sm:$0xff]  ;;  %v1416_v53 = vld [vmem:[%s2758_s2 + $0x130] sm:$0xff] }
  0x6b   : > { %1855 = vmatpush3.bf16.msra.mxu1 %v1852_v39  ;;  %v680_v39 = vld [vmem:[%s2758_s2 + $0x70] sm:$0xff]  ;;  %v1916_v44 = vpack.c.bf16 %v1411_v43, %v1410_v42  ;;  %v1414_v49 = vld [vmem:[%s2758_s2 + $0x120] sm:$0xff]  ;;  %v1417_v54 = vld [vmem:[%s2758_s2 + $0x138] sm:$0xff] }
  0x6c   : > { %1843 = vmatpush3.bf16.msra.mxu0 %v1840_v37  ;;  %1857 = vmatprep.subr.bf16.mxu1 %v1856_v45  ;;  %v679_v37 = vld [vmem:[%s2758_s2 + $0x68] sm:$0xff]  ;;  %v1912_v41 = vpack.c.bf16 %v681_v40, %v680_v39  ;;  %v1421_v60 = vld [vmem:[%s2758_s2 + $0x158] sm:$0xff]  ;;  %v1426_v7 = vld [vmem:[%s2760_s4] ss:$0 sm:$0xff] }
  0x6d   : > { %1845 = vmatprep.subr.bf16.mxu0 %v1844_v46  ;;  %v1908_v38 = vpack.c.bf16 %v679_v37, %v678_v36  ;;  %v1419_v57 = vld [vmem:[%s2758_s2 + $0x148] sm:$0xff]  ;;  %v1425_v3 = vld [vmem:[%s2758_s2 + $0x178] sm:$0xff]  ;;  %v1033_v18 = vld [vmem:[%s2762_s6] sm:$0xff] }
  0x6e   : > { %v1423_v63 = vld [vmem:[%s2758_s2 + $0x168] sm:$0xff]  ;;  %v1112_v23 = vld [vmem:[%s2763_s7 + $0x20] sm:$0xff]  ;;  %v1114_v26 = vld [vmem:[%s2763_s7 + $0x30] sm:$0xff] }
  0x6f   : > { %1859 = vmatpush3.bf16.msra.mxu1 %v1856_v45  ;;  %v1412_v45 = vld [vmem:[%s2758_s2 + $0x110] sm:$0xff]  ;;  %v1113_v24 = vld [vmem:[%s2763_s7 + $0x28] sm:$0xff]  ;;  %v1115_v27 = vld [vmem:[%s2763_s7 + $0x38] sm:$0xff] }
  0x70   : > { %1847 = vmatpush3.bf16.msra.mxu0 %v1844_v46  ;;  %1861 = vmatprep.subr.bf16.mxu1 %v1860_v51  ;;  %v1413_v46 = vld [vmem:[%s2758_s2 + $0x118] sm:$0xff]  ;;  %v1117_v30 = vld [vmem:[%s2763_s7 + $0x48] sm:$0xff]  ;;  %v1194_v43 = vld [vmem:[%s2764_s8] sm:$0xff] }
  0x71   : > { %1849 = vmatprep.subr.bf16.mxu0 %v1848_v52  ;;  %v1920_v47 = vpack.c.bf16 %v1413_v46, %v1412_v45  ;;  %v1119_v33 = vld [vmem:[%s2763_s7 + $0x58] sm:$0xff]  ;;  %v1121_v36 = vld [vmem:[%s2763_s7 + $0x68] sm:$0xff] }
  0x72   : > { %v1123_v39 = vld [vmem:[%s2763_s7 + $0x78] sm:$0xff] }
  0x73   : > { %1863 = vmatpush3.bf16.msra.mxu1 %v1860_v51 }
  0x74   : > { %1851 = vmatpush3.bf16.msra.mxu0 %v1848_v52  ;;  %1865 = vmatprep.subr.bf16.mxu1 %v1864_v55  ;;  %v1924_v52 = vpack.c.bf16 %v1415_v50, %v1414_v49  ;;  %v1196_v49 = vld [vmem:[%s2764_s8 + $0x10] sm:$0xff]  ;;  %v1197_v50 = vld [vmem:[%s2764_s8 + $0x18] sm:$0xff] }
  0x75   : > { %1948 = vmatprep.subr.bf16.mxu0 %v2207_v6 }
  0x77   : > { %1613 = vmatmul.mubr.msk.f32.vlgmr.msra.gmra.mrb[0].mxu0 %vm371_vm0, %v558_v56  ;;  %1867 = vmatpush3.bf16.msra.mxu1 %v1864_v55  ;;  %v1928_v55 = vpack.c.bf16 %v1417_v54, %v1416_v53  ;;  %v1418_v56 = vld [vmem:[%s2758_s2 + $0x140] sm:$0xff]  ;;  %v1199_v53 = vld [vmem:[%s2764_s8 + $0x28] sm:$0xff] }
  0x78   : > { %1869 = vmatprep.subr.bf16.mxu1 %v1868_v59  ;;  %v1932_v58 = vpack.c.bf16 %v1419_v57, %v1418_v56  ;;  %1724 = vmatprep.mubr.msk.f32.mxu0 %vm2208_vm1, %v2206_v0  ;;  %v1202_v57 = vld [vmem:[%s2764_s8 + $0x40] sm:$0xff] }
  0x7b   : > { %1871 = vmatpush3.bf16.msra.mxu1 %v1868_v59  ;;  %v1420_v59 = vld [vmem:[%s2758_s2 + $0x150] sm:$0xff] }
  0x7c   : > { %1873 = vmatprep.subr.bf16.mxu1 %v1872_v62  ;;  %v1936_v61 = vpack.c.bf16 %v1421_v60, %v1420_v59  ;;  %v1204_v60 = vld [vmem:[%s2764_s8 + $0x50] sm:$0xff] }
  0x7f   : > { %1875 = vmatpush3.bf16.msra.mxu1 %v1872_v62  ;;  %v1422_v62 = vld [vmem:[%s2758_s2 + $0x160] sm:$0xff] }
  0x80   : > { %1877 = vmatprep.subr.bf16.mxu1 %v1876_v2  ;;  %v1940_v1 = vpack.c.bf16 %v1423_v63, %v1422_v62  ;;  %v1206_v63 = vld [vmem:[%s2764_s8 + $0x60] sm:$0xff] }
  0x83   : > { %1879 = vmatpush3.bf16.msra.mxu1 %v1876_v2  ;;  %v1424_v2 = vld [vmem:[%s2758_s2 + $0x170] sm:$0xff] }
  0x84   : > { %1881 = vmatprep.subr.bf16.mxu1 %v1880_v5  ;;  %v1944_v4 = vpack.c.bf16 %v1425_v3, %v1424_v2  ;;  %v1208_v3 = vld [vmem:[%s2764_s8 + $0x70] sm:$0xff] }
  0x87   : > { %1883 = vmatpush3.bf16.msra.mxu1 %v1880_v5 }
  0x88   : > { %1885 = vmatprep.subr.bf16.mxu1 %v1884_v8 }
 0x13d   : > { %v1576_v9 = vpop.f32.mrb[0].mxu1 }
 0x13e   : > { %v467_v10 = vpop.f32.mrb[1].mxu1 }
 0x14a   : > { %v1614_v11 = vpop.f32.mrb[0].mxu0 }
 0x14b   : > { %v2002_v13 = vadd.f32 %v1614_v11, %v1576_v9  ;;  %v640_v14 = vpop.f32.mrb[1].mxu0 }
 0x14c   : > { %v2003_v15 = vadd.f32 %v640_v14, %v467_v10 }
 0x14d   : > { %v659_v16 = vadd.f32 %v2002_v13, %v1393_v12 }
 0x14e   : > { %v658_v17 = vadd.f32 %v2003_v15, %v1393_v12  ;;  %v958_v15 = vld [vmem:[%s2761_s5] sm:$0xff] }
 0x14f   : > { %v661_v20 = vmax.f32 %v659_v16, 0.0  ;;  %v1108_v16 = vld [vmem:[%s2763_s7] sm:$0xff] }
 0x150   : > { %v660_v21 = vmax.f32 %v658_v17, 0.0  ;;  %v1109_v17 = vld [vmem:[%s2763_s7 + $0x8] sm:$0xff] }
 0x151   : > { %663 = vst [vmem:[#allocation2 + $0x9] sm:$0xff] %v661_v20  ;;  %v1955_v19 = vpack.c.bf16 %v1109_v17, %v1108_v16 }
 0x152   : > { %662 = vst [vmem:[#allocation2 + $0x1] sm:$0xff] %v660_v21  ;;  %1647 = vmatprep.mubr.f32.mxu1 %v660_v21  ;;  %v1111_v21 = vld [vmem:[%s2763_s7 + $0x18] sm:$0xff] }
 0x153   : > { %1648 = vmatmul.mubr.f32.vlgmr.msra.gmra.mrb[2].mxu1 %v661_v20  ;;  %v1110_v20 = vld [vmem:[%s2763_s7 + $0x10] sm:$0xff] }
 0x154   : > { %1887 = vmatpush3.bf16.msra.mxu1 %v1884_v8 }
 0x155   : > { %1889 = vmatprep.subr.bf16.mxu1 %v1888_v22 }
 0x158   : > { %1891 = vmatpush3.bf16.msra.mxu1 %v1888_v22  ;;  %v852_v5 = vld [vmem:[#allocation2 + $0xa] sm:$0xff]  ;;  %v1958_v22 = vpack.c.bf16 %v1111_v21, %v1110_v20 }
 0x159   : > { %v664_v28 = vld [vmem:[#allocation2] sm:$0xff]  ;;  %1893 = vmatprep.subr.bf16.mxu1 %v1892_v25  ;;  %v665_v48 = vld [vmem:[#allocation2 + $0x8] sm:$0xff] }
 0x15a   : > { %1682 = vmatprep.mubr.f32.mxu1 %v664_v28  ;;  %v851_v51 = vld [vmem:[#allocation2 + $0x2] sm:$0xff]  ;;  %v1964_v28 = vpack.c.bf16 %v1115_v27, %v1114_v26 }
 0x15c   : > { %1895 = vmatpush3.bf16.msra.mxu1 %v1892_v25  ;;  %v1961_v25 = vpack.c.bf16 %v1113_v24, %v1112_v23 }
 0x15d   : > { %1897 = vmatprep.subr.bf16.mxu1 %v1896_v29 }
 0x160   : > { %1899 = vmatpush3.bf16.msra.mxu1 %v1896_v29  ;;  %v1116_v29 = vld [vmem:[%s2763_s7 + $0x40] sm:$0xff] }
 0x161   : > { %1901 = vmatprep.subr.bf16.mxu1 %v1900_v32  ;;  %v1967_v31 = vpack.c.bf16 %v1117_v30, %v1116_v29 }
 0x164   : > { %1903 = vmatpush3.bf16.msra.mxu1 %v1900_v32  ;;  %v1118_v32 = vld [vmem:[%s2763_s7 + $0x50] sm:$0xff] }
 0x165   : > { %1905 = vmatprep.subr.bf16.mxu1 %v1904_v35  ;;  %v1970_v34 = vpack.c.bf16 %v1119_v33, %v1118_v32 }
 0x168   : > { %1907 = vmatpush3.bf16.msra.mxu1 %v1904_v35  ;;  %v1120_v35 = vld [vmem:[%s2763_s7 + $0x60] sm:$0xff] }
 0x169   : > { %1909 = vmatprep.subr.bf16.mxu1 %v1908_v38  ;;  %v1973_v37 = vpack.c.bf16 %v1121_v36, %v1120_v35 }
 0x16c   : > { %1911 = vmatpush3.bf16.msra.mxu1 %v1908_v38  ;;  %v1122_v38 = vld [vmem:[%s2763_s7 + $0x70] sm:$0xff] }
 0x16d   : > { %1913 = vmatprep.subr.bf16.mxu1 %v1912_v41  ;;  %v1976_v40 = vpack.c.bf16 %v1123_v39, %v1122_v38 }
 0x170   : > { %1915 = vmatpush3.bf16.msra.mxu1 %v1912_v41 }
 0x171   : > { %1917 = vmatprep.subr.bf16.mxu1 %v1916_v44 }
 0x173   : > { %1683 = vmatmul.mubr.f32.vlgmr.msra.gmra.mrb[2].mxu1 %v665_v48 }
 0x174   : > { %1919 = vmatpush3.bf16.msra.mxu1 %v1916_v44  ;;  %1717 = vmatprep.mubr.f32.mxu1 %v851_v51  ;;  %v1195_v44 = vld [vmem:[%s2764_s8 + $0x8] sm:$0xff]  ;;  %v1982_v51 = vpack.c.bf16 %v1197_v50, %v1196_v49 }
 0x175   : > { %1921 = vmatprep.subr.bf16.mxu1 %v1920_v47  ;;  %v1979_v46 = vpack.c.bf16 %v1195_v44, %v1194_v43 }
 0x178   : > { %1923 = vmatpush3.bf16.msra.mxu1 %v1920_v47 }
 0x179   : > { %1925 = vmatprep.subr.bf16.mxu1 %v1924_v52 }
 0x17c   : > { %1927 = vmatpush3.bf16.msra.mxu1 %v1924_v52  ;;  %v1198_v52 = vld [vmem:[%s2764_s8 + $0x20] sm:$0xff] }
 0x17d   : > { %1929 = vmatprep.subr.bf16.mxu1 %v1928_v55  ;;  %v1985_v54 = vpack.c.bf16 %v1199_v53, %v1198_v52 }
 0x180   : > { %1931 = vmatpush3.bf16.msra.mxu1 %v1928_v55  ;;  %v1200_v55 = vld [vmem:[%s2764_s8 + $0x30] sm:$0xff] }
 0x181   : > { %1933 = vmatprep.subr.bf16.mxu1 %v1932_v58 }
 0x184   : > { %1935 = vmatpush3.bf16.msra.mxu1 %v1932_v58  ;;  %v1203_v58 = vld [vmem:[%s2764_s8 + $0x48] sm:$0xff] }
 0x185   : > { %1937 = vmatprep.subr.bf16.mxu1 %v1936_v61  ;;  %v1991_v59 = vpack.c.bf16 %v1203_v58, %v1202_v57 }
 0x188   : > { %1939 = vmatpush3.bf16.msra.mxu1 %v1936_v61  ;;  %v1205_v61 = vld [vmem:[%s2764_s8 + $0x58] sm:$0xff] }
 0x189   : > { %1941 = vmatprep.subr.bf16.mxu1 %v1940_v1  ;;  %v1994_v62 = vpack.c.bf16 %v1205_v61, %v1204_v60 }
 0x18c   : > { %1943 = vmatpush3.bf16.msra.mxu1 %v1940_v1  ;;  %v1207_v1 = vld [vmem:[%s2764_s8 + $0x68] sm:$0xff] }
 0x18d   : > { %1945 = vmatprep.subr.bf16.mxu1 %v1944_v4  ;;  %v1997_v2 = vpack.c.bf16 %v1207_v1, %v1206_v63 }
 0x190   : > { %1947 = vmatpush3.bf16.msra.mxu1 %v1944_v4  ;;  %v1209_v4 = vld [vmem:[%s2764_s8 + $0x78] sm:$0xff] }
 0x193   : > { %1718 = vmatmul.mubr.f32.vlgmr.msra.gmra.mrb[2].mxu1 %v852_v5  ;;  %v2000_v5 = vpack.c.bf16 %v1209_v4, %v1208_v3 }
 0x266   : > { %v1719_v8 = vpop.f32.mrb[2].mxu1 }
 0x267   : > { %v955_v9 = vadd.f32 %v1719_v8, %v1426_v7  ;;  %v936_v10 = vpop.f32.mrb[3].mxu1 }
 0x268   : > { %v954_v11 = vadd.f32 %v1426_v7, %v936_v10 }
 0x269   : > { %v957_v12 = vmax.f32 %v955_v9, 0.0 }
 0x26a   : > { %v956_v13 = vmax.f32 %v954_v11, 0.0 }
 0x26c   : > { %v1949_v14 = vpack.c.bf16 %v957_v12, %v956_v13 }
 0x26e   : > { %1950 = vmatpush3.bf16.msra.mxu0 %v1949_v14 }
 0x26f   : > { %1951 = vmatprep.subr.bf16.mxu0 %v2207_v6 }
 0x271   : > { %1725 = vmatmul.mubr.msk.f32.vlgmr.msra.gmra.mrb[2].mxu0 %vm959_vm2, %v958_v15 }
 0x272   : > { %1953 = vmatpush3.bf16.msra.mxu0 %v1949_v14  ;;  %1731 = vmatprep.mubr.msk.f32.mxu0 %vm2208_vm1, %v2206_v0 }
 0x273   : > { %1954 = vmatprep.subr.bf16.mxu0 %v2207_v6 }
 0x275   : > { %1732 = vmatmul.mubr.msk.f32.vlgmr.msra.gmra.mrb[4].mxu0 %vm959_vm2, %v1033_v18 }
 0x276   : > { %1956 = vmatpush3.bf16.msra.mxu0 %v1955_v19  ;;  %1766 = vmatprep.mubr.msk.f32.mxu0 %vm2208_vm1, %v2206_v0 }
 0x277   : > { %1957 = vmatprep.subr.bf16.mxu0 %v2207_v6 }
 0x27a   : > { %1959 = vmatpush3.bf16.msra.mxu0 %v1958_v22 }
 0x27b   : > { %1960 = vmatprep.subr.bf16.mxu0 %v2207_v6 }
 0x27e   : > { %1962 = vmatpush3.bf16.msra.mxu0 %v1961_v25 }
 0x27f   : > { %1963 = vmatprep.subr.bf16.mxu0 %v2207_v6 }
 0x282   : > { %1965 = vmatpush3.bf16.msra.mxu0 %v1964_v28 }
 0x283   : > { %1966 = vmatprep.subr.bf16.mxu0 %v2207_v6 }
 0x286   : > { %1968 = vmatpush3.bf16.msra.mxu0 %v1967_v31 }
 0x287   : > { %1969 = vmatprep.subr.bf16.mxu0 %v2207_v6 }
 0x28a   : > { %1971 = vmatpush3.bf16.msra.mxu0 %v1970_v34 }
 0x28b   : > { %1972 = vmatprep.subr.bf16.mxu0 %v2207_v6 }
 0x28e   : > { %1974 = vmatpush3.bf16.msra.mxu0 %v1973_v37 }
 0x28f   : > { %1975 = vmatprep.subr.bf16.mxu0 %v2207_v6 }
 0x292   : > { %1977 = vmatpush3.bf16.msra.mxu0 %v1976_v40 }
 0x293   : > { %1978 = vmatprep.subr.bf16.mxu0 %v2207_v6 }
 0x344   : > { %v1029_v41 = vpop.f32.mrb[2].mxu0 }
 0x345   : > { %v1726_v42 = vpop.f32.mrb[3].mxu0 }
 0x348   : > { %v1103_v45 = vpop.f32.mrb[4].mxu0 }
 0x349   : > { %v1107_v47 = vmax.f32 %v1029_v41, %v1103_v45  ;;  %v1733_v48 = vpop.f32.mrb[5].mxu0 }
 0x34b   : > { %1767 = vmatmul.mubr.f32.vlgmr.msra.gmra.mrb[6].mxu0 %v1107_v47 }
 0x34c   : > { %1980 = vmatpush3.bf16.msra.mxu0 %v1979_v46  ;;  %1801 = vmatprep.mubr.msk.f32.mxu0 %vm2208_vm1, %v2206_v0  ;;  %v1201_v0 = vld [vmem:[%s2764_s8 + $0x38] sm:$0xff] }
 0x34d   : > { %1981 = vmatprep.subr.bf16.mxu0 %v2207_v6  ;;  %v1988_v56 = vpack.c.bf16 %v1201_v0, %v1200_v55 }
 0x350   : > { %1983 = vmatpush3.bf16.msra.mxu0 %v1982_v51 }
 0x351   : > { %1984 = vmatprep.subr.bf16.mxu0 %v2207_v6 }
 0x354   : > { %1986 = vmatpush3.bf16.msra.mxu0 %v1985_v54 }
 0x355   : > { %1987 = vmatprep.subr.bf16.mxu0 %v2207_v6 }
 0x358   : > { %1989 = vmatpush3.bf16.msra.mxu0 %v1988_v56 }
 0x359   : > { %1990 = vmatprep.subr.bf16.mxu0 %v2207_v6 }
 0x35c   : > { %1992 = vmatpush3.bf16.msra.mxu0 %v1991_v59 }
 0x35d   : > { %1993 = vmatprep.subr.bf16.mxu0 %v2207_v6 }
 0x360   : > { %1995 = vmatpush3.bf16.msra.mxu0 %v1994_v62 }
 0x361   : > { %1996 = vmatprep.subr.bf16.mxu0 %v2207_v6 }
 0x364   : > { %1998 = vmatpush3.bf16.msra.mxu0 %v1997_v2 }
 0x365   : > { %1999 = vmatprep.subr.bf16.mxu0 %v2207_v6 }
 0x368   : > { %2001 = vmatpush3.bf16.msra.mxu0 %v2000_v5 }
 0x36b   : > { %1802 = vmatmul.mubr.f32.vlgmr.msra.gmra.mrb[8].mxu0 %v1107_v47 }
 0x41e   : > { %v1190_v7 = vpop.f32.mrb[6].mxu0 }
 0x41f   : > { %v1768_v8 = vpop.f32.mrb[7].mxu0 }
 0x43e   : > { %v1276_v9 = vpop.f32.mrb[8].mxu0 }
 0x43f   : > { %v1280_v10 = vmax.f32 %v1190_v7, %v1276_v9  ;;  %v1803_v11 = vpop.f32.mrb[9].mxu0 }
 0x441   : > { %1281 = vst.msk [vmem:[%s365_s17] sm:$0xff] %vm371_vm0, %v1280_v10 }
 0x442   : > { %2143 = shalt.err (!%p2140_p7)
}
 0x443   : > { %s2144_s14 = scalar_lea.hbm %s2711_s23, 128  ;;  %s2148_s16 = scalar_lea.hbm %s2765_s9, 256 }
 0x444   : > { %p2145_p9 = scmp.ne.s32.totalorder %s2711_s23, %s2144_s14  ;;  %p2149_p5 = scmp.lt.u32.totalorder %s2711_s23, %s2765_s9 }
 0x445   : > { %p2150_p2 = scmp.lt.u32.totalorder %s2148_s16, %s2144_s14  ;;  %p2152_p4 = scmp.lt.u32.totalorder %s2144_s14, %s2711_s23 }
 0x446   : > { %p2146_p1 = pnand %p2145_p9, %p2354_p12 }
 0x447   : > { %p2151_p11 = por %p2150_p2, %p2149_p5 }
 0x448   : > { %p2147_p0 = pneg %p2146_p1 }
 0x449   : > { %p2153_p6 = por %p2152_p4, %p2151_p11 }
 0x44b   : > { %p2154_p8 = pnand %p2153_p6, %p2147_p0 }
 0x44d   : > { %2157 = shalt.err (!%p2154_p8)
}
 0x44e   : > { %2016 = dma.vmem_to_hbm [thread:$0]  (%p2354_p12), %s2713_s25, 128, %s2711_s23, %s1283_s27  }
 0x44f PF: > { %s2787_s26 = sld [smem:[#allocation12_spill]]  ;;  %s1308_s22 = sand.u32 1, %s2188_s30  }
 0x450   : > { %p2789_p13 = scmp.ge.s32.totalorder %s2200_s12, 2  ;;  %s1309_s21 = scalar_lea.sflag [#allocation5], %s1308_s22 }
 0x455   : > { %p2788_p10 = scmp.ne.s32.totalorder %s2787_s26, 0 }
 0x457   : > { %p2027_p3 = pnand %p2789_p13, %p2788_p10 }
 0x459   : > { %2183 = dma.done.wait (!%p2027_p3), %s1309_s21, 128  }
 0x45a   : > { %2185 = vsyncadd (!%p2027_p3), %s1309_s21, 4294967168  ;;  %s2790_s12 = sld [smem:[#allocation13_spill]]  ;;  %s2791_s30 = smov %s2192_s10 }
 0x45b   : > { %s2792_s10 = smov %s2196_s11  ;;  %s2793_s11 = smov %s2350_s28 }
 0x460   : > { %p23_p7 = scmp.ge.s32.totalorder %s2790_s12, 4  }
 0x462   :  { %25 = sbr.rel (!%p23_p7) target bundleno = 6 (0x6), region = 109 }
 0x469   :  { %1314 = vsyncpa [#allocation4], 1 }
 0x46a   :  { %1316 = vsyncpa [#allocation4 + $0x1], 1 }
 0x46b   :  { %1317 = vsyncpa [#allocation7], 1 }
 0x46c   :  { %1318 = vsyncpa [#allocation5], 1 }
 0x46d   :  { %1320 = vsyncpa [#allocation5 + $0x1], 1 }

</bundles_post_ra>
